<compile_context>
chip_gen: v5e
topology: v5e:2x2
jax: 0.10.0
libtpu: 0.0.40
codegen_flags: <defaults>
</compile_context>

<pallas_src>
import math

import jax
import jax.numpy as jnp
from jax.experimental import pallas as pl
from jax.experimental.pallas import tpu as pltpu


def _pe_add_kernel(x_ref, pe_ref, o_ref):
    # x_ref : (tS, B, D) input tile  (B on sublanes, D on lanes)
    # pe_ref: (tS, D)    positional-encoding rows (lane-dense, same dtype as x)
    # o_ref : (tS, B, D)
    # Pure element-wise add with a sublane broadcast over the batch axis.
    o_ref[...] = x_ref[...] + pe_ref[...][:, None, :]


def make_positional_encoding(d_model: int, max_len: int = 5000,
                             dtype=jnp.float32) -> jnp.ndarray:
    """Build the (max_len, 1, d_model) sinusoidal buffer (same math as PyTorch).

    Build it in the model dtype here (once, at init) so the forward pass never
    has to cast the full buffer per call.
    """
    position = jnp.arange(0, max_len, dtype=jnp.float32)[:, None]          # (L, 1)
    div_term = jnp.exp(
        jnp.arange(0, d_model, 2, dtype=jnp.float32) * (-math.log(10000.0) / d_model)
    )                                                                       # (D/2,)
    angles = position * div_term                                            # (L, D/2)
    pe = jnp.zeros((max_len, d_model), dtype=jnp.float32)
    pe = pe.at[:, 0::2].set(jnp.sin(angles))
    pe = pe.at[:, 1::2].set(jnp.cos(angles))
    return pe[:, None, :].astype(dtype)                                     # (L, 1, D)


def _vmem_capacity_bytes() -> int:
    """Physical VMEM of the current chip; conservative 64 MiB if unknown."""
    try:
        return int(pltpu.get_tpu_info().vmem_capacity_bytes)
    except Exception:
        return 64 * 1024 * 1024


def _choose_tile_s(S: int, B: int, D: int, itemsize: int,
                   target_bytes: int, min_grid_steps: int = 4) -> int:
    """Sequence rows per x tile.

    - roughly target_bytes per x tile (streaming efficiency),
    - at least `min_grid_steps` grid steps for large inputs so both v7x
      TensorCores get work under dimension_semantics=("parallel",),
    - a multiple of 8 so pe's 2-D (tS, D) block satisfies sublane tiling.
    Caller guarantees S >= 8 and that an 8-row tile fits the budget.
    """
    rows_budget = max(1, target_bytes // max(1, B * D * itemsize))
    rows_split = max(1, pl.cdiv(S, min_grid_steps))
    rows = min(rows_budget, rows_split)
    rows = max(8, (rows // 8) * 8)          # multiple of 8, at least 8
    return int(min(rows, S))


def positional_encoding_forward(x: jnp.ndarray, pe: jnp.ndarray) -> jnp.ndarray:
    """x: (S, B, D); pe: (max_len, 1, D). Returns x + pe[:S] (dtype of x)."""
    S, B, D = x.shape
    max_len = pe.shape[0]
    assert pe.shape == (max_len, 1, D), "pe must be (max_len, 1, d_model)"
    assert max_len >= S, "sequence longer than positional-encoding buffer"

    # Fallback only: build pe in the model dtype at init instead (this cast is
    # a full HBM round trip over the (max_len, 1, D) buffer every call).
    if pe.dtype != x.dtype:
        pe = pe.astype(x.dtype)

    itemsize = jnp.dtype(x.dtype).itemsize

    # Per-chip budgets: 128-MiB-VMEM chips (v5e/v6e) get bigger tiles and a
    # higher scoped-VMEM limit than 64-MiB chips (v7x).
    vmem_phys = _vmem_capacity_bytes()
    if vmem_phys >= 128 * 1024 * 1024:
        target_tile = 8 * 1024 * 1024
        vmem_limit = 64 * 1024 * 1024
    else:
        target_tile = 4 * 1024 * 1024
        vmem_limit = 32 * 1024 * 1024

    row_bytes = B * D * itemsize
    # Shapes the (tS, B, D) tiling can't handle well -> plain XLA add (which is
    # at HBM roofline and fuses into neighbors anyway).
    if S < 8 or 8 * row_bytes > target_tile:
        return x + pe[:S]

    tS = _choose_tile_s(S, B, D, itemsize, target_tile)
    grid = (pl.cdiv(S, tS),)

    # Free reshape (drops the size-1 dim): lane-dense (max_len, D) buffer so
    # the pe tile has no padded sublane and the in-kernel add is a clean
    # sublane broadcast.  NOTE: when S % tS != 0, the last pe block may extend
    # past S (and possibly past max_len); Pallas pads that edge block and the
    # corresponding output rows are masked on writeback, so results stay
    # correct.
    pe2d = pe.reshape(max_len, D)

    cost = pl.CostEstimate(
        flops=S * B * D,
        transcendentals=0,
        bytes_accessed=(2 * S * B * D + S * D) * itemsize,
    )

    return pl.pallas_call(
        _pe_add_kernel,
        out_shape=jax.ShapeDtypeStruct((S, B, D), x.dtype),
        grid_spec=pltpu.PrefetchScalarGridSpec(
            num_scalar_prefetch=0,
            grid=grid,
            in_specs=[
                # x: tile tS rows of the sequence; full (B, D) trailing extent
                # satisfies the (8,128) rule for any B, D.
                pl.BlockSpec((tS, B, D), lambda i: (i, 0, 0)),
                # pe: lane-dense 2-D block, tS (multiple of 8) on sublanes.
                pl.BlockSpec((tS, D), lambda i: (i, 0)),
            ],
            out_specs=pl.BlockSpec((tS, B, D), lambda i: (i, 0, 0)),
        ),
        compiler_params=pltpu.CompilerParams(
            # Independent tiles -> shard the grid across both TCs on v7x.
            dimension_semantics=("parallel",),
            vmem_limit_bytes=vmem_limit,
        ),
        cost_estimate=cost,
    )(x, pe2d)


if __name__ == "__main__":
    # Small shapes consistent with the module: seq=8, batch=2, d_model=32.
    S, B, D = 8, 2, 32
    MAX_LEN = 64

    key = jax.random.PRNGKey(0)
    x = jax.random.normal(key, (S, B, D), dtype=jnp.float32)

    pe = make_positional_encoding(D, max_len=MAX_LEN, dtype=jnp.float32)

    out = positional_encoding_forward(x, pe)
    out = jax.block_until_ready(out)

    # Reference check in plain JAX (same math as the PyTorch module).
    ref = x + pe[:S]
    assert out.shape == x.shape
    assert out.dtype == x.dtype
    assert jnp.allclose(out, ref, atol=1e-6), "mismatch vs reference"

    print("KERNEL_OK")
</pallas_src>

<mosaic_0001>
module attributes {stable_mosaic.version = 11 : i64} {
  func.func @_pe_add_kernel(%arg0: i32, %arg1: memref<8x2x32xf32, #tpu.memory_space<vmem>>, %arg2: memref<8x32xf32, #tpu.memory_space<vmem>>, %arg3: memref<8x2x32xf32, #tpu.memory_space<vmem>>) attributes {dimension_semantics = [#tpu.dimension_semantics<parallel>], iteration_bounds = array<i64: 1>, scalar_prefetch = 0 : i64, scratch_operands = 0 : i64, tpu.core_type = #tpu.core_type<tc>, window_params = [{transform_indices = @transform_0, window_bounds = array<i64: 8, 2, 32>}, {transform_indices = @transform_1, window_bounds = array<i64: 8, 32>}, {transform_indices = @transform_2, window_bounds = array<i64: 8, 2, 32>}]} {
    %c0 = arith.constant 0 : index
    %c0_0 = arith.constant 0 : index
    %c0_1 = arith.constant 0 : index
    %0 = vector.load %arg1[%c0, %c0_0, %c0_1] : memref<8x2x32xf32, #tpu.memory_space<vmem>>, vector<8x2x32xf32>
    %c0_2 = arith.constant 0 : index
    %c0_3 = arith.constant 0 : index
    %1 = vector.load %arg2[%c0_2, %c0_3] : memref<8x32xf32, #tpu.memory_space<vmem>>, vector<8x32xf32>
    %2 = vector.shape_cast %1 : vector<8x32xf32> to vector<8x1x32xf32>
    %3 = vector.broadcast %2 : vector<8x1x32xf32> to vector<8x2x32xf32>
    %4 = arith.addf %0, %3 : vector<8x2x32xf32>
    %c0_4 = arith.constant 0 : index
    %c0_5 = arith.constant 0 : index
    %c0_6 = arith.constant 0 : index
    %5 = vector.load %arg3[%c0_4, %c0_5, %c0_6] : memref<8x2x32xf32, #tpu.memory_space<vmem>>, vector<8x2x32xf32>
    tpu.vector_store %arg3[%c0_4, %c0_5, %c0_6], %4 {strides = array<i32>} : memref<8x2x32xf32, #tpu.memory_space<vmem>>, vector<8x2x32xf32>,
    return
  }
  func.func @transform_0(%arg0: i32) -> (i32, i32, i32) {
    %c0_i32 = arith.constant 0 : i32
    %c0_i32_0 = arith.constant 0 : i32
    %c0_i32_1 = arith.constant 0 : i32
    return %arg0, %c0_i32, %c0_i32_0 : i32, i32, i32
  }
  func.func @transform_1(%arg0: i32) -> (i32, i32) {
    %c0_i32 = arith.constant 0 : i32
    %c0_i32_0 = arith.constant 0 : i32
    return %arg0, %c0_i32 : i32, i32
  }
  func.func @transform_2(%arg0: i32) -> (i32, i32, i32) {
    %c0_i32 = arith.constant 0 : i32
    %c0_i32_0 = arith.constant 0 : i32
    %c0_i32_1 = arith.constant 0 : i32
    return %arg0, %c0_i32, %c0_i32_0 : i32, i32, i32
  }
}

</mosaic_0001>

<bundles_post_ra>
// kernel: tpu_custom_call.1
= control target key start
LH: loop header
LB: loop body
LE: loop exit
PB: predicated region body
PF: predicated region fallthrough
CT: control target
= control target key end

     0   :  { %vm53_vm0 = vcmask 254976   ;;  %s165_s0 = inlined_call_operand.vmem [shape: f32[8,2,32], index: 0, kind: input, shape index: {}]   ;;  %s166_s1 = inlined_call_operand.vmem [shape: f32[64,32], index: 1, kind: input, shape index: {}]   ;;  %s167_s2 = inlined_call_operand.hbm [shape: f32[8,2,32], index: 2, kind: output, shape index: {}]  }
   0x1   :  { %v12_v0 = vld [vmem:[%s165_s0] sm:$0x3]  ;;  %v13_v2 = vld [vmem:[%s165_s0 + $0x2] sm:$0x3]  ;;  %v14_v5 = vld [vmem:[%s165_s0 + $0x4] sm:$0x3] }
   0x2   :  { %v20_v1 = vld [vmem:[%s166_s1] sm:$0xff]  ;;  %v16_v9 = vld [vmem:[%s165_s0 + $0x8] sm:$0x3]  ;;  %v17_v16 = vld [vmem:[%s165_s0 + $0xa] sm:$0x3] }
   0x3   :  { %v29_v3 = vperm.slane %v20_v1, 0  ;;  %v22_v4 = vrot.slane %v20_v1, 1  ;;  %v23_v6 = vrot.slane %v20_v1, 2  ;;  %v24_v7 = vrot.slane %v20_v1, 3  ;;  %v15_v8 = vld [vmem:[%s165_s0 + $0x6] sm:$0x3] }
   0x4   :  { %v25_v10 = vrot.slane %v20_v1, 4  ;;  %v26_v11 = vrot.slane %v20_v1, 5  ;;  %v27_v19 = vrot.slane %v20_v1, 6  ;;  %v28_v20 = vrot.slane %v20_v1, 7  ;;  %v18_v24 = vld [vmem:[%s165_s0 + $0xc] sm:$0x3] }
   0x5   :  { %v45_v12 = vadd.f32 %v29_v3, %v12_v0  ;;  %v30_v13 = vperm.slane %v22_v4, 0  ;;  %v31_v14 = vperm.slane %v23_v6, 0  ;;  %v32_v15 = vperm.slane %v24_v7, 0 }
   0x6   :  { %v33_v17 = vperm.slane %v25_v10, 0  ;;  %v34_v18 = vperm.slane %v26_v11, 0 }
   0x7   :  { %54 = vst.msk [vmem:[#allocation2] sm:$0x3] %vm53_vm0, %v45_v12  ;;  %v46_v21 = vadd.f32 %v30_v13, %v13_v2  ;;  %v47_v22 = vadd.f32 %v31_v14, %v14_v5  ;;  %v48_v23 = vadd.f32 %v32_v15, %v15_v8 }
   0x8   :  { %7 = vsyncpa [#allocation3], 0  ;;  %v49_v25 = vadd.f32 %v33_v17, %v16_v9  ;;  %v35_v26 = vperm.slane %v27_v19, 0  ;;  %v19_v27 = vld [vmem:[%s165_s0 + $0xe] sm:$0x3]  ;;  %v36_v28 = vperm.slane %v28_v20, 0  ;;  %v50_v29 = vadd.f32 %v34_v18, %v17_v16 }
   0x9   :  { %55 = vst.msk [vmem:[#allocation2 + $0x2] sm:$0x3] %vm53_vm0, %v46_v21  ;;  %s109_s26 = smov [#allocation2]   ;;  %s68_s30 = sshll.u32 %s167_s2, 4  ;;  %s69_s30 = int_to_ptr.hbm [resolvable:$true] %s68_s30 }
   0xa   :  { %s66_s27 = sshll.u32 %s109_s26, 4  ;;  %56 = vst.msk [vmem:[#allocation2 + $0x4] sm:$0x3] %vm53_vm0, %v47_v22  ;;  %v51_v30 = vadd.f32 %v35_v26, %v18_v24  ;;  %v52_v31 = vadd.f32 %v36_v28, %v19_v27  ;;  %s110_s0 = smov 32   ;;  %s67_s27 = int_to_ptr.vmem [resolvable:$true] %s66_s27 }
   0xb   :  { %57 = vst.msk [vmem:[#allocation2 + $0x6] sm:$0x3] %vm53_vm0, %v48_v23  ;;  %s111_s3 = smov 2  }
   0xc   :  { %58 = vst.msk [vmem:[#allocation2 + $0x8] sm:$0x3] %vm53_vm0, %v49_v25 }
   0xd   :  { %59 = vst.msk [vmem:[#allocation2 + $0xa] sm:$0x3] %vm53_vm0, %v50_v29 }
   0xe   :  { %60 = vst.msk [vmem:[#allocation2 + $0xc] sm:$0x3] %vm53_vm0, %v51_v30 }
   0xf   :  { %61 = vst.msk [vmem:[#allocation2 + $0xe] sm:$0x3] %vm53_vm0, %v52_v31 }
  0x10   :  { %74 = dma.vmem_to_hbm [thread:$0]  %s67_s27, 256, %s69_s30, [#allocation3], %s110_s0, %s110_s0, %s111_s3  }
  0x11   :  { %107 = dma.done.wait [#allocation3], 256  }
  0x12   :  { %108 = vsyncadd [#allocation3], 4294967040 }
  0x13   :  { %79 = vsyncpa [#allocation3], 1 }

</bundles_post_ra>
